<compile_context>
chip_gen: v6e
topology: v6e:2x2x1
jax: 0.10.0
libtpu: 0.0.40
codegen_flags: <defaults>
</compile_context>

<pallas_src>
import jax
import jax.numpy as jnp
from jax.experimental import pallas as pl
from jax.experimental.pallas import tpu as pltpu


# ~8 MiB per block (input + output combined): amortizes the ~0.35 us per-step
# overhead even at v7x's 3.2 TB/s HBM, while 2x (double-buffered) stays under
# the explicit 32 MiB VMEM limit below on every generation.
_TARGET_BLOCK_BYTES = 8 * 2**20
_VMEM_LIMIT_BYTES = 32 << 20   # raise v5e's 16 MiB scoped default; fits v7x's 64 MiB physical
_PAD_WIDTH = 512               # lane-dense width used when padding is required


def _sublane_mult(itemsize):
    """Native sublane tile for the input dtype (u8 -> 32, bf16 -> 16, f32 -> 8)."""
    return 8 * max(1, 4 // max(1, itemsize))


def _pack_2d(total, sub_mult):
    """Lane-dense (rows, width) packing of `total` elements with rows a multiple
    of the input's native sublane tile. Returns None if no exact packing exists."""
    for w in (4096, 2048, 1024, 512, 256, 128):
        if total % w == 0 and (total // w) % sub_mult == 0:
            return (total // w, w)
    return None


def _row_tile(rows, width, in_itemsize, out_itemsize, sub_mult):
    """Rows per block: multiple of the native sublane tile, ~8 MiB (in+out) total,
    capped so the grid keeps >= 4 steps (pipeline overlap) with an even count
    when possible (balanced split across v7x's two TensorCores)."""
    bytes_per_row = width * (in_itemsize + out_itemsize)
    rt = _TARGET_BLOCK_BYTES // max(bytes_per_row, 1)
    rt = (int(rt) // sub_mult) * sub_mult
    rt = max(rt, sub_mult)

    # Keep at least ~4 grid steps when rows allow: with grid=(1,) the input
    # DMA, VPU pass and output DMA serialize (no overlap).
    if rows >= 4 * sub_mult:
        cap = (rows // 4 // sub_mult) * sub_mult
        rt = min(rt, max(cap, sub_mult))
    rt = min(rt, rows)

    # Prefer an even step count so dimension_semantics=("parallel",) splits
    # evenly across two TensorCores on v7x.
    steps = -(-rows // rt)
    if steps > 1 and steps % 2 == 1:
        alt = -(-rows // (steps + 1))
        alt = -(-alt // sub_mult) * sub_mult
        if 0 < alt <= rt and (-(-rows // alt)) % 2 == 0:
            rt = alt
    return rt


def _pallas_elementwise_apply(func, x, out_dtype):
    """Apply a JAX-traceable *elementwise* `func` via a Pallas TPU kernel."""
    orig_shape = x.shape
    total = x.size
    in_itemsize = jnp.dtype(x.dtype).itemsize
    out_itemsize = jnp.dtype(out_dtype).itemsize
    sub_mult = _sublane_mult(in_itemsize)

    packed = _pack_2d(total, sub_mult)
    if packed is not None:
        x2 = x.reshape(packed)
        pad_total = total
    else:
        # Pad the flattened buffer up to a lane-dense multiple; a few KiB of
        # extra traffic is far cheaper than masked partial stores on a narrow
        # (e.g. 784-wide) lane dim.
        chunk = _PAD_WIDTH * sub_mult
        pad_total = -(-total // chunk) * chunk
        flat = x.reshape(-1)
        x2 = jnp.pad(flat, (0, pad_total - total)).reshape(
            pad_total // _PAD_WIDTH, _PAD_WIDTH)
    rows, width = x2.shape

    rt = _row_tile(rows, width, in_itemsize, out_itemsize, sub_mult)
    grid = (pl.cdiv(rows, rt),)

    def kernel(x_ref, o_ref):
        # Elementwise work (including the u8 -> f32 cast) happens on the VPU.
        o_ref[...] = func(x_ref[...]).astype(o_ref.dtype)

    out2 = pl.pallas_call(
        kernel,
        out_shape=jax.ShapeDtypeStruct((rows, width), out_dtype),
        grid=grid,
        in_specs=[pl.BlockSpec((rt, width), lambda i: (i, 0))],
        out_specs=pl.BlockSpec((rt, width), lambda i: (i, 0)),
        compiler_params=pltpu.CompilerParams(
            dimension_semantics=("parallel",),
            vmem_limit_bytes=_VMEM_LIMIT_BYTES,
        ),
    )(x2)

    out_flat = out2.reshape(-1)
    if pad_total != total:
        out_flat = out_flat[:total]
    return out_flat.reshape(orig_shape)


class PallasLambda:
    """JAX/Pallas port of the torch `Lambda(nn.Module)`.

    forward(x) == func(x).  The elementwise part of `func` runs inside the
    Pallas kernel; an optional reshape (torch .view) stays as JAX glue.
    """
    # TODO(synk): arbitrary (non-JAX-traceable / non-elementwise) Python
    # callables passed to the torch Lambda cannot be translated generically;
    # only traceable elementwise funcs (+ a reshape) are supported here.

    def __init__(self, elementwise_func, reshape_fn=None, out_dtype=jnp.float32):
        self.elementwise_func = elementwise_func
        self.reshape_fn = reshape_fn          # glue: shape -> new shape tuple
        self.out_dtype = out_dtype

    def __call__(self, x):
        if self.reshape_fn is not None:
            x = x.reshape(self.reshape_fn(x.shape))  # glue (torch .view)
        return _pallas_elementwise_apply(self.elementwise_func, x, self.out_dtype)


if __name__ == "__main__":
    key = jax.random.PRNGKey(0)
    N, C, H, W = 2, 4, 16, 16

    # Deterministic synthetic "image" batch with pixel-like values in [0, 255].
    # Fed to the kernel as uint8: the u8 -> f32 cast happens inside the kernel
    # (4x less input HBM traffic for this memory-bound op).
    x = jax.random.randint(key, (N, C, H, W), 0, 256, dtype=jnp.int32)
    x = x.astype(jnp.uint8)

    # Lambda(lambda x: (x / 255.).view(x.size(0), -1))
    lam = PallasLambda(
        elementwise_func=lambda v: v.astype(jnp.float32) / 255.0,
        reshape_fn=lambda shape: (shape[0], -1),
        out_dtype=jnp.float32,
    )

    out = lam(x)
    jax.block_until_ready(out)

    # Reference check against plain JAX.
    ref = (x.astype(jnp.float32) / 255.0).reshape(N, -1)
    assert out.shape == (N, C * H * W)
    assert out.dtype == jnp.float32
    assert jnp.allclose(out, ref, atol=1e-6, rtol=1e-6)

    print("KERNEL_OK")
</pallas_src>

<mosaic_0001>
module attributes {stable_mosaic.version = 11 : i64} {
  func.func @kernel(%arg0: i32, %arg1: memref<32x512xi8, #tpu.memory_space<vmem>>, %arg2: memref<32x512xf32, #tpu.memory_space<vmem>>) attributes {dimension_semantics = [#tpu.dimension_semantics<parallel>], iteration_bounds = array<i64: 1>, scalar_prefetch = 0 : i64, scratch_operands = 0 : i64, tpu.core_type = #tpu.core_type<tc>, window_params = [{transform_indices = @transform_0, window_bounds = array<i64: 32, 512>}, {transform_indices = @transform_1, window_bounds = array<i64: 32, 512>}]} {
    %c0 = arith.constant 0 : index
    %c0_0 = arith.constant 0 : index
    %0 = vector.load %arg1[%c0, %c0_0] : memref<32x512xi8, #tpu.memory_space<vmem>>, vector<32x512xi8>
    %1 = arith.uitofp %0 : vector<32x512xi8> to vector<32x512xf32>
    %cst = arith.constant 2.550000e+02 : f32
    %2 = vector.broadcast %cst : f32 to vector<32x512xf32>
    %3 = arith.divf %1, %2 : vector<32x512xf32>
    %c0_1 = arith.constant 0 : index
    %c0_2 = arith.constant 0 : index
    %4 = vector.load %arg2[%c0_1, %c0_2] : memref<32x512xf32, #tpu.memory_space<vmem>>, vector<32x512xf32>
    tpu.vector_store %arg2[%c0_1, %c0_2], %3 {strides = array<i32>} : memref<32x512xf32, #tpu.memory_space<vmem>>, vector<32x512xf32>,
    return
  }
  func.func @transform_0(%arg0: i32) -> (i32, i32) {
    %c0_i32 = arith.constant 0 : i32
    %c0_i32_0 = arith.constant 0 : i32
    return %arg0, %c0_i32 : i32, i32
  }
  func.func @transform_1(%arg0: i32) -> (i32, i32) {
    %c0_i32 = arith.constant 0 : i32
    %c0_i32_0 = arith.constant 0 : i32
    return %arg0, %c0_i32 : i32, i32
  }
}

</mosaic_0001>

<bundles_post_ra>
// kernel: tpu_custom_call.1
= control target key start
LH: loop header
LB: loop body
LE: loop exit
PB: predicated region body
PF: predicated region fallthrough
CT: control target
= control target key end

     0   :  { %6 = vsyncpa [#allocation3], 0  ;;  %s191_s0 = inlined_call_operand.hbm [shape: u8[32,512], index: 0, kind: input, shape index: {}]   ;;  %s192_s1 = inlined_call_operand.hbm [shape: f32[32,512], index: 1, kind: output, shape index: {}]  }
   0x1   :  { %7 = vsyncpa [#allocation4], 0  ;;  %s171_s6 = smov [#allocation2]  }
   0x2   :  { %s14_s7 = sshll.u32 %s171_s6, 4  ;;  %s15_s7 = int_to_ptr.vmem [resolvable:$true] %s14_s7 }
   0x3   :  { %s135_s8 = scalar_lea.vmem %s15_s7, 512  ;;  %p140_p1 = scmp.lt.s32.totalorder %s15_s7, %s15_s7 }
   0x4   :  { %p136_p0 = scmp.ne.s32.totalorder %s15_s7, %s135_s8  ;;  %p141_p2 = scmp.lt.s32.totalorder %s135_s8, %s135_s8 }
   0x6   :  { %p142_p3 = por %p141_p2, %p140_p1 }
   0x8   :  { %p143_p4 = pnand %p142_p3, %p136_p0 }
   0xa   :  { %146 = shalt.err (!%p143_p4)
}
   0xb   :  { %17 = dma.hbm_to_vmem [thread:$0]  %s191_s0, 512, %s15_s7, [#allocation3]  }
   0xc   :  { %167 = dma.done.wait [#allocation3], 512  }
   0xd   :  { %168 = vsyncadd [#allocation3], 4294966784  ;;  %v21_v0 = vld [vmem:[#allocation2] sm:$0xff]  ;;  %v22_v1 = vld [vmem:[#allocation2 + $0x8] sm:$0xff]  ;;  %s172_s0 = smov [#allocation5]  }
   0xe   :  { %v23_v2 = vld [vmem:[#allocation2 + $0x10] sm:$0xff]  ;;  %v25_v3 = vunpack.c.0.s8 %v21_v0  ;;  %v26_v4 = vunpack.c.0.s8 %v22_v1  ;;  %v24_v6 = vld [vmem:[#allocation2 + $0x18] sm:$0xff]  ;;  %v29_v7 = vunpack.c.1.s8 %v21_v0  ;;  %v30_v9 = vunpack.c.1.s8 %v22_v1  ;;  %s111_s11 = sshll.u32 %s172_s0, 4  ;;  %s112_s11 = int_to_ptr.vmem [resolvable:$true] %s111_s11 }
   0xf   :  { %v27_v5 = vunpack.c.0.s8 %v23_v2  ;;  %v28_v8 = vunpack.c.0.s8 %v24_v6  ;;  %v31_v10 = vunpack.c.1.s8 %v23_v2  ;;  %v32_v11 = vunpack.c.1.s8 %v24_v6  ;;  %s147_s12 = scalar_lea.vmem %s112_s11, 2048  ;;  %p152_p6 = scmp.lt.s32.totalorder %s112_s11, %s112_s11 }
  0x10   :  { %v41_v12 = vand.u32 255, %v25_v3  ;;  %v42_v13 = vand.u32 255, %v26_v4  ;;  %v45_v15 = vand.u32 255, %v29_v7  ;;  %v46_v17 = vand.u32 255, %v30_v9  ;;  %p148_p5 = scmp.ne.s32.totalorder %s112_s11, %s147_s12  ;;  %p153_p7 = scmp.lt.s32.totalorder %s147_s12, %s147_s12 }
  0x11   :  { %v43_v14 = vand.u32 255, %v27_v5  ;;  %v44_v16 = vand.u32 255, %v28_v8  ;;  %v47_v18 = vand.u32 255, %v31_v10  ;;  %v48_v19 = vand.u32 255, %v32_v11 }
  0x12   :  { %v57_v20 = vcvt.s32.f32 %v41_v12  ;;  %v58_v21 = vcvt.s32.f32 %v42_v13  ;;  %v61_v23 = vcvt.s32.f32 %v45_v15  ;;  %v62_v25 = vcvt.s32.f32 %v46_v17  ;;  %p154_p8 = por %p153_p7, %p152_p6 }
  0x13   :  { %v59_v22 = vcvt.s32.f32 %v43_v14  ;;  %v60_v24 = vcvt.s32.f32 %v44_v16  ;;  %v63_v26 = vcvt.s32.f32 %v47_v18  ;;  %v64_v27 = vcvt.s32.f32 %v48_v19 }
  0x14   :  { %v74_v28 = vmul.f32 0.003921569, %v57_v20  ;;  %v75_v29 = vmul.f32 0.003921569, %v58_v21  ;;  %v33_v31 = vunpack.c.2.s8 %v21_v0  ;;  %v78_v33 = vmul.f32 0.003921569, %v61_v23  ;;  %p155_p9 = pnand %p154_p8, %p148_p5 }
  0x15   :  { %v76_v30 = vmul.f32 0.003921569, %v59_v22  ;;  %v77_v32 = vmul.f32 0.003921569, %v60_v24  ;;  %v79_v34 = vmul.f32 0.003921569, %v62_v25  ;;  %v34_v35 = vunpack.c.2.s8 %v22_v1 }
  0x16   :  { %90 = vst [vmem:[#allocation5] sm:$0xff] %v74_v28  ;;  %91 = vst [vmem:[#allocation5 + $0x8] sm:$0xff] %v75_v29  ;;  %v80_v36 = vmul.f32 0.003921569, %v63_v26  ;;  %v81_v37 = vmul.f32 0.003921569, %v64_v27  ;;  %v35_v39 = vunpack.c.2.s8 %v23_v2  ;;  %v36_v41 = vunpack.c.2.s8 %v24_v6 }
  0x17   :  { %92 = vst [vmem:[#allocation5 + $0x10] sm:$0xff] %v76_v30  ;;  %v49_v38 = vand.u32 255, %v33_v31  ;;  %93 = vst [vmem:[#allocation5 + $0x18] sm:$0xff] %v77_v32  ;;  %v50_v40 = vand.u32 255, %v34_v35  ;;  %v37_v42 = vunpack.c.3.s8 %v21_v0  ;;  %v38_v43 = vunpack.c.3.s8 %v22_v1 }
  0x18   :  { %94 = vst [vmem:[#allocation5 + $0x20] sm:$0xff] %v78_v33  ;;  %95 = vst [vmem:[#allocation5 + $0x28] sm:$0xff] %v79_v34  ;;  %v51_v45 = vand.u32 255, %v35_v39  ;;  %v39_v46 = vunpack.c.3.s8 %v23_v2  ;;  %v40_v47 = vunpack.c.3.s8 %v24_v6  ;;  %v52_v49 = vand.u32 255, %v36_v41 }
  0x19   :  { %96 = vst [vmem:[#allocation5 + $0x30] sm:$0xff] %v80_v36  ;;  %97 = vst [vmem:[#allocation5 + $0x38] sm:$0xff] %v81_v37  ;;  %v65_v44 = vcvt.s32.f32 %v49_v38  ;;  %v66_v48 = vcvt.s32.f32 %v50_v40  ;;  %v53_v50 = vand.u32 255, %v37_v42  ;;  %v54_v51 = vand.u32 255, %v38_v43 }
  0x1a   :  { %v67_v53 = vcvt.s32.f32 %v51_v45  ;;  %v55_v54 = vand.u32 255, %v39_v46  ;;  %v56_v55 = vand.u32 255, %v40_v47  ;;  %v68_v57 = vcvt.s32.f32 %v52_v49 }
  0x1b   :  { %v82_v52 = vmul.f32 0.003921569, %v65_v44  ;;  %v83_v56 = vmul.f32 0.003921569, %v66_v48  ;;  %v69_v58 = vcvt.s32.f32 %v53_v50  ;;  %v70_v59 = vcvt.s32.f32 %v54_v51 }
  0x1c   :  { %v84_v60 = vmul.f32 0.003921569, %v67_v53  ;;  %v71_v61 = vcvt.s32.f32 %v55_v54  ;;  %v72_v62 = vcvt.s32.f32 %v56_v55  ;;  %v85_v63 = vmul.f32 0.003921569, %v68_v57 }
  0x1d   :  { %98 = vst [vmem:[#allocation5 + $0x40] sm:$0xff] %v82_v52  ;;  %99 = vst [vmem:[#allocation5 + $0x48] sm:$0xff] %v83_v56  ;;  %v86_v0 = vmul.f32 0.003921569, %v69_v58  ;;  %v87_v1 = vmul.f32 0.003921569, %v70_v59 }
  0x1e   :  { %100 = vst [vmem:[#allocation5 + $0x50] sm:$0xff] %v84_v60  ;;  %v88_v2 = vmul.f32 0.003921569, %v71_v61  ;;  %v89_v3 = vmul.f32 0.003921569, %v72_v62  ;;  %101 = vst [vmem:[#allocation5 + $0x58] sm:$0xff] %v85_v63 }
  0x1f   :  { %102 = vst [vmem:[#allocation5 + $0x60] sm:$0xff] %v86_v0  ;;  %103 = vst [vmem:[#allocation5 + $0x68] sm:$0xff] %v87_v1 }
  0x20   :  { %104 = vst [vmem:[#allocation5 + $0x70] sm:$0xff] %v88_v2  ;;  %105 = vst [vmem:[#allocation5 + $0x78] sm:$0xff] %v89_v3 }
  0x21   :  { %158 = shalt.err (!%p155_p9)
}
  0x22   :  { %s173_s13 = smov 512   ;;  %s174_s14 = smov 32  }
  0x23   :  { %117 = dma.vmem_to_hbm [thread:$0]  %s112_s11, 2048, %s192_s1, [#allocation4], %s173_s13, %s173_s13, %s174_s14  }
  0x24   :  { %169 = dma.done.wait [#allocation4], 2048  }
  0x25   :  { %170 = vsyncadd [#allocation4], 4294965248 }
  0x26   :  { %121 = vsyncpa [#allocation3], 1 }
  0x27   :  { %122 = vsyncpa [#allocation4], 1 }

</bundles_post_ra>
